<compile_context>
chip_gen: v6e
topology: v6e:2x2x1
jax: 0.10.0
libtpu: 0.0.40
codegen_flags: <defaults>
</compile_context>

<pallas_src>
import functools

import jax
import jax.numpy as jnp
from jax.experimental import pallas as pl
from jax.experimental.pallas import tpu as pltpu


_LN_EPS = 1e-12
_MASK_BIAS = -10000.0
_VMEM_LIMIT = 64 * 1024 * 1024


def _compiler_params():
    return pltpu.CompilerParams(
        dimension_semantics=("parallel",),
        vmem_limit_bytes=_VMEM_LIMIT,
    )


def _layernorm_f32(y, g, b):
    mu = jnp.mean(y, axis=-1, keepdims=True)
    yc = y - mu
    var = jnp.mean(yc * yc, axis=-1, keepdims=True)
    return (yc * jax.lax.rsqrt(var + _LN_EPS)) * g + b


def _gelu_f32(y):
    # TODO(synk): HF BERT uses the erf-based GELU; tanh approximation kept.
    c = 0.7978845608028654  # sqrt(2/pi)
    return 0.5 * y * (1.0 + jnp.tanh(c * (y + 0.044715 * y * y * y)))


# ------------------------- embedding LayerNorm kernel -----------------------

def _emb_ln_kernel(x_ref, g_ref, b_ref, o_ref):
    o_ref[0] = _layernorm_f32(x_ref[0], g_ref[...], b_ref[...]).astype(o_ref.dtype)


def embedding_layernorm(emb, gamma, beta):
    """LayerNorm over the hidden axis; fp32 in, bf16 activation stream out."""
    B, S, H = emb.shape
    return pl.pallas_call(
        _emb_ln_kernel,
        out_shape=jax.ShapeDtypeStruct((B, S, H), jnp.bfloat16),
        grid=(B,),
        in_specs=[
            pl.BlockSpec((1, S, H), lambda b: (b, 0, 0)),
            pl.BlockSpec((1, H), lambda b: (0, 0)),
            pl.BlockSpec((1, H), lambda b: (0, 0)),
        ],
        out_specs=pl.BlockSpec((1, S, H), lambda b: (b, 0, 0)),
        compiler_params=_compiler_params(),
    )(emb, gamma.reshape(1, H), beta.reshape(1, H))


# ----------------------- fused encoder-layer kernel -------------------------

def _encoder_layer_kernel(x_ref, mask_ref,
                          wqkv_ref, bqkv_ref, wo_ref, bo_ref,
                          ln1g_ref, ln1b_ref,
                          w1_ref, b1_ref, w2_ref, b2_ref,
                          ln2g_ref, ln2b_ref,
                          *rest, num_heads, with_head):
    if with_head:
        fcw_ref, fcb_ref, o_ref, logits_ref = rest
    else:
        (o_ref,) = rest

    nH = num_heads
    xb = x_ref[0]                         # (S, H) bf16 activation stream
    x32 = xb.astype(jnp.float32)
    m = mask_ref[0]                       # (1, S) additive mask, all heads share

    # ---- fused QKV projection + per-head attention + output projection ----
    # Head selection is a leading-dim index into head-major weights (free);
    # each head's context is projected and accumulated directly -> no concat.
    attn = bo_ref[...] + x32              # start from bias + residual
    for h in range(nH):                   # static unroll over heads
        q = (jnp.dot(xb, wqkv_ref[h], preferred_element_type=jnp.float32)
             + bqkv_ref[h])               # 1/sqrt(dh) already folded into w_q/b_q
        k = (jnp.dot(xb, wqkv_ref[nH + h], preferred_element_type=jnp.float32)
             + bqkv_ref[nH + h])
        v = (jnp.dot(xb, wqkv_ref[2 * nH + h], preferred_element_type=jnp.float32)
             + bqkv_ref[2 * nH + h])
        # scores = q @ k^T  (contract last dims; bf16 MXU inputs, f32 accum)
        s = jax.lax.dot_general(
            q.astype(jnp.bfloat16), k.astype(jnp.bfloat16),
            (((1,), (1,)), ((), ())), preferred_element_type=jnp.float32) + m
        s = s - jnp.max(s, axis=-1, keepdims=True)
        p = jnp.exp(s)
        l = jnp.sum(p, axis=-1, keepdims=True)
        ctx = jnp.dot(p.astype(jnp.bfloat16), v.astype(jnp.bfloat16),
                      preferred_element_type=jnp.float32)        # (S, dh)
        # deferred softmax normalisation: one (S, dh) scale via EUP reciprocal
        ctx = ctx * pl.reciprocal(l, approx=True)
        attn = attn + jnp.dot(ctx.astype(jnp.bfloat16), wo_ref[h],
                              preferred_element_type=jnp.float32)  # (S, H)

    h1 = _layernorm_f32(attn, ln1g_ref[...], ln1b_ref[...])        # f32 stats

    # ---- fused FFN (+ residual + LayerNorm); (S, I) never leaves VMEM ----
    h1b = h1.astype(jnp.bfloat16)
    t = jnp.dot(h1b, w1_ref[...], preferred_element_type=jnp.float32) + b1_ref[...]
    t = _gelu_f32(t)
    y2 = (jnp.dot(t.astype(jnp.bfloat16), w2_ref[...],
                  preferred_element_type=jnp.float32)
          + b2_ref[...] + h1)
    out = _layernorm_f32(y2, ln2g_ref[...], ln2b_ref[...])
    o_ref[0] = out.astype(o_ref.dtype)

    if with_head:
        # 128-lane padded classifier head fused into the last layer:
        # lane-dense fp32 store, sliced to y_num outside the kernel.
        logits = (jnp.dot(out.astype(jnp.bfloat16), fcw_ref[...],
                          preferred_element_type=jnp.float32) + fcb_ref[...])
        logits_ref[0] = logits


def encoder_layer(x, add_mask, lyr, *, num_heads, head=None):
    """x: (B, S, H) bf16 -> (B, S, H) bf16  [+ (B, S, P) f32 logits if head]."""
    B, S, H = x.shape
    I = lyr["w1"].shape[1]
    nH = num_heads
    with_head = head is not None

    weight_args = [lyr["w_qkv_hm"], lyr["b_qkv_hm"], lyr["wo_hm"], lyr["bo"],
                   lyr["ln1_g"], lyr["ln1_b"],
                   lyr["w1"], lyr["b1"], lyr["w2"], lyr["b2"],
                   lyr["ln2_g"], lyr["ln2_b"]]
    if with_head:
        weight_args += [head["fc_w_pad"], head["fc_b_pad"]]

    def _const_spec(arr):
        # whole-array block, constant index -> DMA'd once, VMEM-resident.
        return pl.BlockSpec(arr.shape, lambda b, _n=arr.ndim: (0,) * _n)

    in_specs = ([pl.BlockSpec((1, S, H), lambda b: (b, 0, 0)),
                 pl.BlockSpec((1, 1, S), lambda b: (b, 0, 0))]
                + [_const_spec(w) for w in weight_args])

    out_shape = jax.ShapeDtypeStruct((B, S, H), jnp.bfloat16)
    out_specs = pl.BlockSpec((1, S, H), lambda b: (b, 0, 0))
    if with_head:
        P = head["fc_w_pad"].shape[1]
        out_shape = (out_shape, jax.ShapeDtypeStruct((B, S, P), jnp.float32))
        out_specs = (out_specs, pl.BlockSpec((1, S, P), lambda b: (b, 0, 0)))

    # Advisory cost estimate for XLA scheduling around the custom call.
    flops = B * (6 * S * H * H + 4 * S * S * H + 2 * S * H * H + 4 * S * H * I)
    transcendentals = B * (nH * S * S + S * I)
    bytes_accessed = (2 * B * S * H * 2 + B * S * 4
                      + (4 * H * H + 2 * H * I) * 2
                      + (10 * H + I) * 4)
    if with_head:
        P = head["fc_w_pad"].shape[1]
        flops += 2 * B * S * H * P
        bytes_accessed += H * P * 2 + P * 4 + B * S * P * 4

    out = pl.pallas_call(
        functools.partial(_encoder_layer_kernel,
                          num_heads=nH, with_head=with_head),
        out_shape=out_shape,
        grid=(B,),
        in_specs=in_specs,
        out_specs=out_specs,
        cost_estimate=pl.CostEstimate(flops=flops,
                                      transcendentals=transcendentals,
                                      bytes_accessed=bytes_accessed),
        compiler_params=_compiler_params(),
    )(x, add_mask, *weight_args)
    return out


# --------------------------- parameter construction -------------------------

def init_params(key, *, vocab=100, hidden=32, num_layers=2, heads=2,
                inter=128, max_pos=64, type_vocab=2, y_num=5):
    keys = iter(jax.random.split(key, 256))

    def nrm(shape):
        return 0.02 * jax.random.normal(next(keys), shape, dtype=jnp.float32)

    dh = hidden // heads
    scale = 1.0 / (dh ** 0.5)

    def head_major_in(w):       # (H, H) -> (nH, H, dh): per-head input projection
        return jnp.transpose(w.reshape(hidden, heads, dh), (1, 0, 2))

    pad_n = ((y_num + 127) // 128) * 128        # lane-dense classifier head
    fc_w = nrm((hidden, y_num))

    p = {
        "num_heads": heads,
        "y_num": y_num,
        "word_emb": nrm((vocab, hidden)).astype(jnp.bfloat16),
        "pos_emb": nrm((max_pos, hidden)).astype(jnp.bfloat16),
        "type_emb": nrm((type_vocab, hidden)).astype(jnp.bfloat16),
        "emb_ln_g": jnp.ones((hidden,), jnp.float32),
        "emb_ln_b": jnp.zeros((hidden,), jnp.float32),
        "head": {
            "fc_w_pad": jnp.pad(fc_w, ((0, 0), (0, pad_n - y_num))).astype(jnp.bfloat16),
            "fc_b_pad": jnp.zeros((1, pad_n), jnp.float32),
        },
        "layers": [],
    }
    for _ in range(num_layers):
        wq, wk, wv, wo = (nrm((hidden, hidden)) for _ in range(4))
        bq = jnp.zeros((hidden,), jnp.float32)
        bk = jnp.zeros((hidden,), jnp.float32)
        bv = jnp.zeros((hidden,), jnp.float32)
        lyr = {
            # head-major QKV: [h] = q_h (pre-scaled), [nH+h] = k_h, [2nH+h] = v_h
            "w_qkv_hm": jnp.concatenate(
                [head_major_in(wq) * scale, head_major_in(wk), head_major_in(wv)],
                axis=0).astype(jnp.bfloat16),
            "b_qkv_hm": jnp.concatenate(
                [bq.reshape(heads, 1, dh) * scale, bk.reshape(heads, 1, dh),
                 bv.reshape(heads, 1, dh)], axis=0),
            # head-major output projection: wo_hm[h] = wo[h*dh:(h+1)*dh, :]
            "wo_hm": wo.reshape(heads, dh, hidden).astype(jnp.bfloat16),
            "bo": jnp.zeros((1, hidden), jnp.float32),
            "ln1_g": jnp.ones((1, hidden), jnp.float32),
            "ln1_b": jnp.zeros((1, hidden), jnp.float32),
            "w1": nrm((hidden, inter)).astype(jnp.bfloat16),
            "b1": jnp.zeros((1, inter), jnp.float32),
            "w2": nrm((inter, hidden)).astype(jnp.bfloat16),
            "b2": jnp.zeros((1, hidden), jnp.float32),
            "ln2_g": jnp.ones((1, hidden), jnp.float32),
            "ln2_b": jnp.zeros((1, hidden), jnp.float32),
        }
        p["layers"].append(lyr)
    return p


# ------------------------------- forward pass -------------------------------

def bert_ed_forward(params, data_x, mask_x):
    """Matches BertED.forward: returns (logits, last_hidden_state)."""
    B, S = data_x.shape
    H = params["word_emb"].shape[1]
    nH = params["num_heads"]

    # --- embeddings: gathers stay in XLA (data-dependent); LN is a kernel ---
    word = jnp.take(params["word_emb"], data_x, axis=0).astype(jnp.float32)
    pos = params["pos_emb"][:S].astype(jnp.float32)[None, :, :]
    tok = params["type_emb"][0].astype(jnp.float32)[None, None, :]  # token_type_ids == 0
    emb = word + pos + tok                                          # (B, S, H) f32
    x = embedding_layernorm(emb, params["emb_ln_g"], params["emb_ln_b"])  # bf16

    # additive attention mask, one row per batch (broadcast over heads in-kernel)
    add_mask = ((1.0 - mask_x.astype(jnp.float32)) * _MASK_BIAS).reshape(B, 1, S)

    # --- transformer layers: one fused pallas_call per layer; the classifier
    #     head is fused into the last layer's epilogue ---
    logits_pad = None
    n_layers = len(params["layers"])
    for li, lyr in enumerate(params["layers"]):
        if li == n_layers - 1:
            x, logits_pad = encoder_layer(x, add_mask, lyr, num_heads=nH,
                                          head=params["head"])
        else:
            x = encoder_layer(x, add_mask, lyr, num_heads=nH)

    bert_enc = x.astype(jnp.float32)                     # (B, S, H), outputs[0]
    logits = logits_pad[..., :params["y_num"]]           # strip lane padding
    return logits, bert_enc


# ----------------------------------- main -----------------------------------

if __name__ == "__main__":
    B, S, Y_NUM, HIDDEN = 2, 8, 5, 32
    params = init_params(jax.random.PRNGKey(0), hidden=HIDDEN, y_num=Y_NUM)

    kx, _ = jax.random.split(jax.random.PRNGKey(0))
    data_x = jax.random.randint(kx, (B, S), 0, 100, dtype=jnp.int32)
    mask_x = jnp.ones((B, S), dtype=jnp.int32).at[:, -2:].set(0)   # some padding

    logits, bert_enc = bert_ed_forward(params, data_x, mask_x)
    jax.block_until_ready((logits, bert_enc))

    assert logits.shape == (B, S, Y_NUM)
    assert bert_enc.shape == (B, S, HIDDEN)
    print("KERNEL_OK")
</pallas_src>

<mosaic_0001>
module attributes {stable_mosaic.version = 11 : i64} {
  func.func @_emb_ln_kernel(%arg0: i32, %arg1: memref<1x8x32xf32, #tpu.memory_space<vmem>>, %arg2: memref<1x32xf32, #tpu.memory_space<vmem>>, %arg3: memref<1x32xf32, #tpu.memory_space<vmem>>, %arg4: memref<1x8x32xbf16, #tpu.memory_space<vmem>>) attributes {dimension_semantics = [#tpu.dimension_semantics<parallel>], iteration_bounds = array<i64: 2>, scalar_prefetch = 0 : i64, scratch_operands = 0 : i64, tpu.core_type = #tpu.core_type<tc>, window_params = [{transform_indices = @transform_0, window_bounds = array<i64: 1, 8, 32>}, {pipeline_mode = #tpu.pipeline_mode<synchronous>, transform_indices = @transform_1, window_bounds = array<i64: 1, 32>}, {pipeline_mode = #tpu.pipeline_mode<synchronous>, transform_indices = @transform_2, window_bounds = array<i64: 1, 32>}, {transform_indices = @transform_3, window_bounds = array<i64: 1, 8, 32>}]} {
    %c0 = arith.constant 0 : index
    %c0_0 = arith.constant 0 : index
    %c0_1 = arith.constant 0 : index
    %0 = vector.load %arg1[%c0, %c0_0, %c0_1] : memref<1x8x32xf32, #tpu.memory_space<vmem>>, vector<1x8x32xf32>
    %1 = vector.shape_cast %0 : vector<1x8x32xf32> to vector<8x32xf32>
    %c0_2 = arith.constant 0 : index
    %c0_3 = arith.constant 0 : index
    %2 = vector.load %arg2[%c0_2, %c0_3] : memref<1x32xf32, #tpu.memory_space<vmem>>, vector<1x32xf32>
    %c0_4 = arith.constant 0 : index
    %c0_5 = arith.constant 0 : index
    %3 = vector.load %arg3[%c0_4, %c0_5] : memref<1x32xf32, #tpu.memory_space<vmem>>, vector<1x32xf32>
    %cst = arith.constant dense<0.000000e+00> : vector<8xf32>
    %4 = vector.multi_reduction <add>, %1, %cst [1] : vector<8x32xf32> to vector<8xf32>
    %5 = vector.shape_cast %4 : vector<8xf32> to vector<8x1xf32>
    %cst_6 = arith.constant 3.200000e+01 : f32
    %6 = vector.broadcast %cst_6 : f32 to vector<8x1xf32>
    %7 = arith.divf %5, %6 : vector<8x1xf32>
    %8 = vector.broadcast %7 : vector<8x1xf32> to vector<8x32xf32>
    %9 = arith.subf %1, %8 : vector<8x32xf32>
    %10 = arith.mulf %9, %9 : vector<8x32xf32>
    %cst_7 = arith.constant dense<0.000000e+00> : vector<8xf32>
    %11 = vector.multi_reduction <add>, %10, %cst_7 [1] : vector<8x32xf32> to vector<8xf32>
    %12 = vector.shape_cast %11 : vector<8xf32> to vector<8x1xf32>
    %cst_8 = arith.constant 3.200000e+01 : f32
    %13 = vector.broadcast %cst_8 : f32 to vector<8x1xf32>
    %14 = arith.divf %12, %13 : vector<8x1xf32>
    %cst_9 = arith.constant 9.99999996E-13 : f32
    %15 = vector.broadcast %cst_9 : f32 to vector<8x1xf32>
    %16 = arith.addf %14, %15 : vector<8x1xf32>
    %17 = math.rsqrt %16 : vector<8x1xf32>
    %18 = vector.broadcast %17 : vector<8x1xf32> to vector<8x32xf32>
    %19 = arith.mulf %9, %18 : vector<8x32xf32>
    %20 = vector.broadcast %2 : vector<1x32xf32> to vector<8x32xf32>
    %21 = arith.mulf %19, %20 : vector<8x32xf32>
    %22 = vector.broadcast %3 : vector<1x32xf32> to vector<8x32xf32>
    %23 = arith.addf %21, %22 : vector<8x32xf32>
    %24 = arith.truncf %23 : vector<8x32xf32> to vector<8x32xbf16>
    %c0_10 = arith.constant 0 : index
    %c0_11 = arith.constant 0 : index
    %c0_12 = arith.constant 0 : index
    %25 = vector.load %arg4[%c0_10, %c0_11, %c0_12] : memref<1x8x32xbf16, #tpu.memory_space<vmem>>, vector<1x8x32xbf16>
    %26 = vector.shape_cast %25 : vector<1x8x32xbf16> to vector<8x32xbf16>
    %27 = vector.shape_cast %24 : vector<8x32xbf16> to vector<1x8x32xbf16>
    tpu.vector_store %arg4[%c0_10, %c0_11, %c0_12], %27 {strides = array<i32>} : memref<1x8x32xbf16, #tpu.memory_space<vmem>>, vector<1x8x32xbf16>,
    return
  }
  func.func @transform_0(%arg0: i32) -> (i32, i32, i32) {
    %c0_i32 = arith.constant 0 : i32
    %c0_i32_0 = arith.constant 0 : i32
    %c0_i32_1 = arith.constant 0 : i32
    return %arg0, %c0_i32, %c0_i32_0 : i32, i32, i32
  }
  func.func @transform_1(%arg0: i32) -> (i32, i32) {
    %c0_i32 = arith.constant 0 : i32
    %c0_i32_0 = arith.constant 0 : i32
    %c0_i32_1 = arith.constant 0 : i32
    return %c0_i32, %c0_i32_0 : i32, i32
  }
  func.func @transform_2(%arg0: i32) -> (i32, i32) {
    %c0_i32 = arith.constant 0 : i32
    %c0_i32_0 = arith.constant 0 : i32
    %c0_i32_1 = arith.constant 0 : i32
    return %c0_i32, %c0_i32_0 : i32, i32
  }
  func.func @transform_3(%arg0: i32) -> (i32, i32, i32) {
    %c0_i32 = arith.constant 0 : i32
    %c0_i32_0 = arith.constant 0 : i32
    %c0_i32_1 = arith.constant 0 : i32
    return %arg0, %c0_i32, %c0_i32_0 : i32, i32, i32
  }
}

</mosaic_0001>

<bundles_post_ra>
// kernel: tpu_custom_call.1
= control target key start
LH: loop header
LB: loop body
LE: loop exit
PB: predicated region body
PF: predicated region fallthrough
CT: control target
= control target key end

     0   :  { %8 = vsyncpa [#allocation3], 0  ;;  %s631_s0 = inlined_call_operand.hbm [shape: f32[2,8,32], index: 0, kind: input, shape index: {}]   ;;  %s632_s1 = inlined_call_operand.vmem [shape: f32[1,32], index: 1, kind: input, shape index: {}]   ;;  %s633_s2 = inlined_call_operand.vmem [shape: f32[1,32], index: 2, kind: input, shape index: {}]   ;;  %s634_s3 = inlined_call_operand.hbm [shape: bf16[2,8,32], index: 3, kind: output, shape index: {}]  }
   0x1   :  { %10 = vsyncpa [#allocation3 + $0x1], 0 }
   0x2   :  { %11 = vsyncpa [#allocation4], 0 }
   0x3   :  { %13 = vsyncpa [#allocation4 + $0x1], 0  ;;  %s483_s12 = smov 0   ;;  %s485_s13 = smov 0  }
   0x4   :  { %s487_s14 = smov 0   ;;  %s489_s15 = smov 0  }
   0x5 LB: > { %s504_s16 = sadd.s32 4294967295, %s459_s15   ;;  %s305_s17 = sadd.s32 4294967294, %s459_s15   ;;  %s459_s15 = sphi %s489_s15, %s651_s15   ;;  %s455_s14 = sphi %s487_s14, %s650_s14   ;;  %s451_s13 = sphi %s485_s13, %s649_s13   ;;  %s447_s12 = sphi %s483_s12, %s648_s12  }
   0x6   : > { %s508_s18 = sadd.s32 1, %s459_s15   ;;  %s26_s19 = sadd.s32 1, %s455_s14 }
   0x7   : > { %s23_s20 = ssub.s32 %s459_s15, %s508_s18  ;;  %p33_p0 = scmp.ne.s32.totalorder %s455_s14, %s451_s13 }
   0x8   : > { %p24_p1 = scmp.eq.s32.totalorder %s23_s20, 0  ;;  %p34_p2 = scmp.eq.s32.totalorder %s459_s15, 0 }
   0x9   : > { %p39_p3 = scmp.ne.s32.totalorder %s451_s13, %s447_s12  ;;  %p40_p4 = scmp.eq.s32.totalorder %s504_s16, 0 }
   0xa   : > { %s520_s21 = scalar_select %p24_p1, %s455_s14, %s26_s19  }
   0xb   : > { %p522_p5 = por %p34_p2, %p33_p0  ;;  %p526_p6 = por %p40_p4, %p39_p3 }
   0xc   : > { %p105_p7 = scmp.eq.s32.totalorder %s504_s16, 1  ;;  %p111_p8 = scmp.eq.s32.totalorder %s305_s17, 1 }
   0xd   : > { %s638_s23 = scalar_select %p526_p6, 1, 0 }
   0xe   : > { %p331_p10 = scmp.lt.s32.totalorder %s459_s15, 2  ;;  %p533_p11 = por %p105_p7, %p33_p0 }
   0xf   : > { %p537_p12 = por %p111_p8, %p39_p3  ;;  %s137_s26 = sand.u32 1, %s455_s14  }
  0x10   : > { %s639_s24 = scalar_select %p533_p11, 1, 0 }
  0x11   : > { %s640_s25 = scalar_select %p537_p12, 1, 0 }
  0x12   : > { %s309_s27 = sshll.u32 %s459_s15, 7  ;;  %s308_s28 = sshll.u32 %s137_s26, 3 }
  0x13   : > { %s546_s4 = scalar_lea.hbm %s631_s0, %s309_s27  ;;  %s141_s5 = scalar_lea.vmem [#allocation2], %s308_s28 }
  0x14   : > { %s148_s6 = sshll.u32 %s141_s5, 4  ;;  %p550_p13 = pnand %p331_p10, %p522_p5  ;;  %s554_s6 = int_to_ptr.vmem [resolvable:$true] %s148_s6 }
  0x15   : > { %s138_s8 = scalar_lea.sflag [#allocation3], %s137_s26  ;;  %s367_s9 = scalar_lea.hbm %s546_s4, 128 }
  0x16   : > { %p368_p2 = scmp.ne.s32.totalorder %s546_s4, %s367_s9  ;;  %p369_p3 = pneg %p550_p13 }
  0x17   : > { %s372_s17 = scalar_lea.hbm %s631_s0, 256  ;;  %p373_p5 = scmp.lt.s32.totalorder %s546_s4, %s631_s0 }
  0x18   : > { %p370_p4 = pnand %p369_p3, %p368_p2  ;;  %p374_p8 = scmp.lt.s32.totalorder %s372_s17, %s367_s9 }
  0x1a   : > { %p371_p7 = pneg %p370_p4  ;;  %p375_p10 = por %p374_p8, %p373_p5 }
  0x1c   : > { %p376_p9 = pnand %p375_p10, %p371_p7 }
  0x1e   : > { %379 = shalt.err (!%p376_p9)
}
  0x1f   : > { %s380_s22 = scalar_lea.vmem %s554_s6, 128  ;;  %s461_s26 = smov [#allocation2]  }
  0x20   : > { %p381_p0 = scmp.ne.s32.totalorder %s554_s6, %s380_s22  ;;  %s385_s27 = sshll.u32 %s461_s26, 4  ;;  %s386_s27 = int_to_ptr.vmem [resolvable:$false] %s385_s27 }
  0x21   : > { %s387_s28 = scalar_lea.vmem %s386_s27, 256  ;;  %p388_p4 = scmp.lt.s32.totalorder %s554_s6, %s386_s27 }
  0x22   : > { %p383_p1 = pnand %p381_p0, %p369_p3  ;;  %p389_p12 = scmp.lt.s32.totalorder %s387_s28, %s380_s22 }
  0x24   : > { %p384_p2 = pneg %p383_p1  ;;  %p390_p11 = por %p389_p12, %p388_p4 }
  0x26   : > { %p391_p6 = pnand %p390_p11, %p384_p2 }
  0x28   : > { %394 = shalt.err (!%p391_p6)
}
  0x29   : > { %326 = dma.hbm_to_vmem [thread:$0]  (!%p550_p13), %s546_s4, 128, %s554_s6, %s138_s8  }
  0x2a   : > { %p642_p9 = scmp.lt.s32.totalorder %s459_s15, 3  ;;  %p643_p7 = scmp.ge.s32.totalorder %s459_s15, 1 }
  0x2c   : > { %p154_p0 = pnand %p643_p7, %p642_p9 }
  0x2d   : > { %s581_s29 = sand.u32 (!%p154_p0), 1, %s451_s13   ;;  %p644_p6 = scmp.ne.s32.totalorder (!%p154_p0), %s638_s23, 0 }
  0x2e   : > { %157 = sbr.rel (%p154_p0) target bundleno = 376 (0x178), region = 32  ;;  %s311_s30 = sshll.u32 (!%p154_p0), %s581_s29, 3 }
  0x2f   : > { %s160_s5 = scalar_lea.sflag (!%p154_p0), [#allocation3], %s581_s29  ;;  %s163_s9 = scalar_lea.vmem (!%p154_p0), [#allocation2], %s311_s30 }
  0x33   : > { %438 = dma.done.wait (%p644_p6), %s160_s5, 128  }
  0x34   : > { %440 = vsyncadd (%p644_p6), %s160_s5, 4294967168  ;;  %vm189_vm0 = vcmask 261120   ;;  %v186_v0 = vld [vmem:[%s163_s9] sm:$0xff]  ;;  %s312_s4 = sshll.u32 %s581_s29, 2  ;;  %s316_s10 = sshll.u32 %s504_s16, 6  ;;  %vm219_vm1 = vcmask 257024  }
  0x35   : > { %v190_v1 = vsel %vm189_vm0, %v186_v0, 0.0  ;;  %v313_v11 = vld [vmem:[%s632_s1] ss:$0 sm:$0xff]  ;;  %s185_s11 = scalar_lea.vmem [#allocation5], %s312_s4  ;;  %s233_s22 = scalar_lea.hbm %s634_s3, %s316_s10 }
  0x36   : > { %191 = vadd.xlane.f32.xlu0 %v190_v1  ;;  %v314_v13 = vld [vmem:[%s633_s2] ss:$0 sm:$0xff]  ;;  %s235_s17 = sshll.u32 %s185_s11, 4  ;;  %s222_s26 = scalar_lea.sflag [#allocation4], %s581_s29  ;;  %s236_s17 = int_to_ptr.vmem [resolvable:$true] %s235_s17 }
  0x37   : > { %s395_s27 = scalar_lea.vmem %s236_s17, 64  ;;  %p645_p12 = scmp.ne.s32.totalorder %s639_s24, 0 }
  0x38   : > { %p396_p11 = scmp.ne.s32.totalorder %s236_s17, %s395_s27  ;;  %s462_s28 = smov [#allocation5]  }
  0x39   : > { %s399_s30 = sshll.u32 %s462_s28, 4  ;;  %s400_s30 = int_to_ptr.vmem [resolvable:$false] %s399_s30 }
  0x3a   : > { %p397_p13 = pnand %p396_p11, %p645_p12  ;;  %s401_s16 = scalar_lea.vmem %s400_s30, 128 }
  0x3b   : > { %p402_p3 = scmp.lt.s32.totalorder %s236_s17, %s400_s30  ;;  %p403_p5 = scmp.lt.s32.totalorder %s401_s16, %s395_s27 }
  0x3c   : > { %p398_p1 = pneg %p397_p13 }
  0x3d   : > { %p404_p8 = por %p403_p5, %p402_p3 }
  0x3f   : > { %p405_p10 = pnand %p404_p8, %p398_p1 }
  0xbf   : > { %v192_v2 = vpop.xlane.xlu0 %191 }
  0xc0   : > { %v194_v3 = vmul.f32 0.03125, %v192_v2 }
  0xc2   : > { %v195_v4 = vsub.f32 %v186_v0, %v194_v3 }
  0xc4   : > { %v196_v5 = vmul.f32 %v195_v4, %v195_v4 }
  0xc6   : > { %v197_v6 = vsel %vm189_vm0, %v196_v5, 0.0 }
  0xc7   : > { %198 = vadd.xlane.f32.xlu0 %v197_v6 }
 0x150   : > { %v199_v7 = vpop.xlane.xlu0 %198 }
 0x151   : > { %v200_v8 = vmul.f32 0.03125, %v199_v7 }
 0x153   : > { %v201_v9 = vadd.f32 1e-12, %v200_v8 }
 0x155   : > { %365 = vrsqrt.f32 %v201_v9 }
 0x162   : > { %v366_v10 = vpop.eup %365 }
 0x163   : > { %v203_v12 = vmul.f32 %v366_v10, %v195_v4 }
 0x165   : > { %v210_v14 = vmul.f32 %v313_v11, %v203_v12 }
 0x167   : > { %v217_v15 = vadd.f32 %v314_v13, %v210_v14 }
 0x169   : > { %v218_v16 = vpack.c.bf16 %v217_v15, %v217_v15 }
 0x16b   : > { %220 = vst.msk [vmem:[%s185_s11] sm:$0xf] %vm219_vm1, %v218_v16 }
 0x16c   : > { %408 = shalt.err (!%p405_p10)
}
 0x16d   : > { %s409_s5 = scalar_lea.hbm %s233_s22, 64  ;;  %s413_s4 = scalar_lea.hbm %s634_s3, 128 }
 0x16e   : > { %p410_p2 = scmp.ne.s32.totalorder %s233_s22, %s409_s5  ;;  %p414_p7 = scmp.lt.s32.totalorder %s233_s22, %s634_s3 }
 0x16f   : > { %p415_p0 = scmp.lt.s32.totalorder %s413_s4, %s409_s5 }
 0x170   : > { %p411_p4 = pnand %p410_p2, %p645_p12 }
 0x171   : > { %p416_p6 = por %p415_p0, %p414_p7 }
 0x172   : > { %p412_p9 = pneg %p411_p4 }
 0x174   : > { %p417_p11 = pnand %p416_p6, %p412_p9 }
 0x176   : > { %420 = shalt.err (!%p417_p11)
}
 0x177   : > { %321 = dma.vmem_to_hbm [thread:$0]  (%p645_p12), %s236_s17, 64, %s233_s22, %s222_s26  }
 0x178 PF: > { %s247_s7 = sand.u32 1, %s447_s12   ;;  %p646_p13 = scmp.ne.s32.totalorder %s640_s25, 0 }
 0x179   : > { %p647_p1 = scmp.ge.s32.totalorder %s459_s15, 2  ;;  %s248_s8 = scalar_lea.sflag [#allocation4], %s247_s7 }
 0x17b   : > { %p328_p3 = pnand %p647_p1, %p646_p13 }
 0x17d   : > { %p329_p5 = pneg %p328_p3 }
 0x17f   : > { %442 = dma.done.wait (%p329_p5), %s248_s8, 64  }
 0x180   : > { %444 = vsyncadd (%p329_p5), %s248_s8, 4294967232  ;;  %p16_p8 = scmp.ge.s32.totalorder %s508_s18, 4   ;;  %s648_s12 = smov %s451_s13 }
 0x181   : > { %s649_s13 = smov %s455_s14  ;;  %s650_s14 = smov %s520_s21 }
 0x182   : > { %s651_s15 = smov %s508_s18  ;;  %18 = sbr.rel (!%p16_p8) target bundleno = 5 (0x5), region = 77 }
 0x187   :  { %253 = vsyncpa [#allocation3], 1 }
 0x188   :  { %255 = vsyncpa [#allocation3 + $0x1], 1 }
 0x189   :  { %256 = vsyncpa [#allocation4], 1 }
 0x18a   :  { %258 = vsyncpa [#allocation4 + $0x1], 1 }

</bundles_post_ra>
